<compile_context>
chip_gen: v6e
topology: v6e:2x2x1
jax: 0.10.0
libtpu: 0.0.40
codegen_flags: <defaults>
</compile_context>

<pallas_src>
import functools

import jax
import jax.numpy as jnp
from jax.experimental import pallas as pl
from jax.experimental.pallas import tpu as pltpu

_EPS = 1e-12  # added to squared norms; matches ATen cosine_embedding_loss


def _class_sep_kernel(cm_col_ref, cm_row_ref, x_ref, o_ref, *, inv_count):
    # x: [N, D] bottleneck vectors; cm_col: [N, 1] int32; cm_row: [1, N] int32.
    x = x_ref[...].astype(jnp.float32)

    # Row-normalise: cos(a,b) = <x_a/|x_a|, x_b/|x_b|>  (EUP rsqrt, free slot).
    sq = jnp.sum(x * x, axis=-1, keepdims=True)             # [N, 1]
    x_n = x * jax.lax.rsqrt(sq + _EPS)                       # [N, D]

    # All-pairs cosine similarity: contract D of both operands directly (no
    # .T materialization). Default precision = single MXU pass, f32 accumulate.
    cos = jax.lax.dot_general(
        x_n, x_n,
        dimension_numbers=(((1,), (1,)), ((), ())),
        preferred_element_type=jnp.float32,
    )                                                        # [N, N]

    # Same-class mask built in-kernel from the class map (broadcasted compare).
    same = cm_col_ref[...] == cm_row_ref[...]                # [N, N] bool

    # CosineEmbeddingLoss with margin = 0, mean reduction over N*N pairs.
    per_pair = jnp.where(same, 1.0 - cos, jnp.maximum(cos, 0.0))
    o_ref[0, 0] = jnp.sum(per_pair) * inv_count              # scalar SMEM store


def class_separation_loss_pallas(bottleneck, cm_col, cm_row):
    n, d = bottleneck.shape
    assert cm_col.shape == (n, 1) and cm_row.shape == (1, n)

    kernel = functools.partial(_class_sep_kernel, inv_count=1.0 / float(n * n))

    # Single-block, gridless path: full arrays resident in VMEM (N is tiny).
    # TODO(synk): for large N, tile the N x N pair matrix over a (rows, cols)
    # grid of ~(512, 512) blocks (both axes "parallel" so v7x's two
    # TensorCores split the work) with full-D row strips as inputs and an
    # SMEM accumulator; the gridless path OOMs VMEM around N ~ 1.5-2k on v7x.
    out = pl.pallas_call(
        kernel,
        out_shape=jax.ShapeDtypeStruct((1, 1), jnp.float32),
        in_specs=[
            pl.BlockSpec(memory_space=pltpu.MemorySpace.VMEM),  # cm_col
            pl.BlockSpec(memory_space=pltpu.MemorySpace.VMEM),  # cm_row
            pl.BlockSpec(memory_space=pltpu.MemorySpace.VMEM),  # bottleneck
        ],
        out_specs=pl.BlockSpec(memory_space=pltpu.MemorySpace.SMEM),
        cost_estimate=pl.CostEstimate(
            flops=2 * n * n * d + 3 * n * d,
            transcendentals=n,
            bytes_accessed=n * d * bottleneck.dtype.itemsize + 2 * n * 4 + 4,
        ),
        compiler_params=pltpu.CompilerParams(
            vmem_limit_bytes=32 * 1024 * 1024,
        ),
    )(cm_col, cm_row, bottleneck)
    return out[0, 0]


class ClassSeparationLossPallas:
    """Mirrors the PyTorch module; stores the class map as two tiny int32
    vectors (column/row layouts) instead of an N x N float target matrix."""

    def __init__(self, class_map):
        cm = jnp.asarray(class_map, dtype=jnp.int32)
        self.cm_col = cm.reshape(-1, 1)   # (N, 1)
        self.cm_row = cm.reshape(1, -1)   # (1, N)

    def __call__(self, bottleneck):
        return class_separation_loss_pallas(bottleneck, self.cm_col, self.cm_row)


def class_separation_loss_ref(bottleneck, class_map):
    # Exact-f32 elementwise reference (no MXU rounding) for the self-check.
    x = bottleneck.astype(jnp.float32)
    cm = jnp.asarray(class_map)
    sq = jnp.sum(x * x, axis=-1)
    denom = jnp.sqrt((sq[:, None] + _EPS) * (sq[None, :] + _EPS))
    dots = jnp.sum(x[:, None, :] * x[None, :, :], axis=-1)
    cos = dots / denom
    same = cm[:, None] == cm[None, :]
    per_pair = jnp.where(same, 1.0 - cos, jnp.maximum(cos, 0.0))
    return jnp.mean(per_pair)


if __name__ == "__main__":
    key = jax.random.PRNGKey(0)

    # Small shapes implied by the module: N bottleneck vectors (one per
    # class_map entry) of hidden size D.
    class_map = [0, 0, 1, 1, 2, 2, 3, 3]   # N = 8
    n, d = len(class_map), 32
    bottleneck = jax.random.normal(key, (n, d), dtype=jnp.float32)

    loss_mod = ClassSeparationLossPallas(class_map)
    out = loss_mod(bottleneck)
    out = jax.block_until_ready(out)

    ref = class_separation_loss_ref(bottleneck, class_map)
    # Tolerance covers the single-pass (default-precision) MXU matmul in the
    # kernel vs. the exact-f32 elementwise reference.
    assert jnp.allclose(out, ref, rtol=1e-2, atol=1e-2), (out, ref)

    print("KERNEL_OK")
</pallas_src>

<mosaic_0001>
module attributes {stable_mosaic.version = 11 : i64} {
  func.func @_class_sep_kernel(%arg0: memref<8x1xi32, #tpu.memory_space<vmem>>, %arg1: memref<1x8xi32, #tpu.memory_space<vmem>>, %arg2: memref<8x32xf32, #tpu.memory_space<vmem>>, %arg3: memref<1x1xf32, #tpu.memory_space<smem>>) attributes {dimension_semantics = [], scalar_prefetch = 0 : i64, scratch_operands = 0 : i64, tpu.core_type = #tpu.core_type<tc>} {
    %c0 = arith.constant 0 : index
    %c0_0 = arith.constant 0 : index
    %0 = vector.load %arg2[%c0, %c0_0] : memref<8x32xf32, #tpu.memory_space<vmem>>, vector<8x32xf32>
    %1 = arith.mulf %0, %0 : vector<8x32xf32>
    %cst = arith.constant dense<0.000000e+00> : vector<8xf32>
    %2 = vector.multi_reduction <add>, %1, %cst [1] : vector<8x32xf32> to vector<8xf32>
    %3 = vector.shape_cast %2 : vector<8xf32> to vector<8x1xf32>
    %cst_1 = arith.constant 9.99999996E-13 : f32
    %4 = vector.broadcast %cst_1 : f32 to vector<8x1xf32>
    %5 = arith.addf %3, %4 : vector<8x1xf32>
    %6 = math.rsqrt %5 : vector<8x1xf32>
    %7 = vector.broadcast %6 : vector<8x1xf32> to vector<8x32xf32>
    %8 = arith.mulf %0, %7 : vector<8x32xf32>
    %cst_2 = arith.constant dense<0.000000e+00> : vector<8x8xf32>
    %9 = tpu.matmul %8, %8, %cst_2 {dimension_numbers = #tpu.dot_dimension_numbers<[1], [1], [0], [0], [0, 0, 1, 0], [], []>} : vector<8x32xf32>, vector<8x32xf32>, vector<8x8xf32> -> vector<8x8xf32>
    %c0_3 = arith.constant 0 : index
    %c0_4 = arith.constant 0 : index
    %10 = vector.load %arg0[%c0_3, %c0_4] : memref<8x1xi32, #tpu.memory_space<vmem>>, vector<8x1xi32>
    %c0_5 = arith.constant 0 : index
    %c0_6 = arith.constant 0 : index
    %11 = vector.load %arg1[%c0_5, %c0_6] : memref<1x8xi32, #tpu.memory_space<vmem>>, vector<1x8xi32>
    %12 = vector.broadcast %10 : vector<8x1xi32> to vector<8x8xi32>
    %13 = vector.broadcast %11 : vector<1x8xi32> to vector<8x8xi32>
    %14 = arith.cmpi eq, %12, %13 : vector<8x8xi32>
    %cst_7 = arith.constant 1.000000e+00 : f32
    %15 = vector.broadcast %cst_7 : f32 to vector<8x8xf32>
    %16 = arith.subf %15, %9 : vector<8x8xf32>
    %cst_8 = arith.constant 0.000000e+00 : f32
    %17 = vector.broadcast %cst_8 : f32 to vector<8x8xf32>
    %18 = arith.maximumf %9, %17 : vector<8x8xf32>
    %19 = arith.select %14, %16, %18 : vector<8x8xi1>, vector<8x8xf32>
    %20 = vector.shape_cast %19 : vector<8x8xf32> to vector<1x8x8xf32>
    %cst_9 = arith.constant dense<0.000000e+00> : vector<1xf32>
    %21 = vector.multi_reduction <add>, %20, %cst_9 [1, 2] : vector<1x8x8xf32> to vector<1xf32>
    %22 = vector.shape_cast %21 : vector<1xf32> to vector<1x1x1xf32>
    %23 = vector.extract %22[0, 0, 0] : f32 from vector<1x1x1xf32>
    %cst_10 = arith.constant 1.562500e-02 : f32
    %24 = arith.mulf %23, %cst_10 : f32
    %c0_11 = arith.constant 0 : index
    %c0_12 = arith.constant 0 : index
    %25 = memref.load %arg3[%c0_11, %c0_12] : memref<1x1xf32, #tpu.memory_space<smem>>
    memref.store %24, %arg3[%c0_11, %c0_12] : memref<1x1xf32, #tpu.memory_space<smem>>
    return
  }
}

</mosaic_0001>

<bundles_post_ra>
// kernel: tpu_custom_call.1
= control target key start
LH: loop header
LB: loop body
LE: loop exit
PB: predicated region body
PF: predicated region fallthrough
CT: control target
= control target key end

     0   :  { %vm17_vm0 = vcmask 261120   ;;  %s205_s0 = inlined_call_operand.vmem [shape: s32[8,1], index: 0, kind: input, shape index: {}]   ;;  %s206_s1 = inlined_call_operand.vmem [shape: s32[1,8], index: 1, kind: input, shape index: {}]   ;;  %s207_s2 = inlined_call_operand.vmem [shape: f32[8,32], index: 2, kind: input, shape index: {}]   ;;  %s208_s3 = inlined_call_operand.hbm [shape: f32[1,1], index: 3, kind: output, shape index: {}]  }
   0x1   :  { %v15_v0 = vld [vmem:[%s207_s2] sm:$0xff] }
   0x2   :  { %8 = vsyncpa [#allocation3], 0  ;;  %v16_v1 = vmul.f32 %v15_v0, %v15_v0  ;;  %v166_v3 = vmov 0.0   ;;  %vm167_vm1 = vmmov 0   ;;  %v97_v4 = vld [vmem:[%s205_s0] sm:$0xff]  ;;  %v168_v5 = vmov 0  }
   0x3   :  { %142 = vmatprep.subr.mxu0 %v166_v3  ;;  %144 = vmatprep.mubr.msk.f32.mxu0 %vm167_vm1, %v166_v3  ;;  %v139_v10 = vld [vmem:[%s206_s1] ss:$0 sm:$0xff]  ;;  %vm110_vm3 = vcmask 64512   ;;  %s169_s17 = smov [#allocation2]  }
   0x4   :  { %v18_v2 = vsel %vm17_vm0, %v16_v1, 0.0  ;;  %153 = vset.pattern.permute.xlu0 %v168_v5 }
   0x5   :  { %19 = vadd.xlane.f32.xlu0 %v18_v2 }
  0x1b   :  { %100 = vperm.xlu0 %153, %v97_v4  }
  0x8e   :  { %v20_v6 = vpop.xlane.xlu0 %19 }
  0x8f   :  { %v21_v7 = vadd.f32 1e-12, %v20_v6 }
  0x91   :  { %154 = vrsqrt.f32 %v21_v7 }
  0x96   :  { %v101_v11 = vpop.permute.xlu0 %100 }
  0x97   :  { %vm106_vm2 = vcmp.eq.s32.totalorder %v101_v11, %v139_v10 }
  0x9e   :  { %v155_v8 = vpop.eup %154 }
  0x9f   :  { %v23_v9 = vmul.f32 %v155_v8, %v15_v0 }
  0xa1   :  { %143 = vmatpush3.xpose.msk.msra.mxu0 %vm17_vm0, %v23_v9 }
  0xa4   :  { %145 = vmatmul.mubr.msk.f32.vlgmr.msra.gmra.mxu0 %vm17_vm0, %v23_v9 }
 0x164   :  { %v93_v12 = vpop.f32.mrf.mxu0 }
 0x165   :  { %v107_v13 = vsub.f32 1.0, %v93_v12  ;;  %v108_v14 = vmax.f32 %v93_v12, 0.0 }
 0x166   :  { %v146_v15 = vpop.f32.mrf.mxu0 }
 0x167   :  { %v109_v16 = vsel %vm106_vm2, %v107_v13, %v108_v14 }
 0x168   :  { %v111_v17 = vsel %vm110_vm3, %v109_v16, 0.0 }
 0x169   :  { %112 = vadd.xlane.f32.xlu1 %v111_v17 }
 0x1f2   :  { %v113_v18 = vpop.xlane.xlu1 %112 }
 0x1f3   :  { %v114_v19 = vrot.slane %v113_v18, 4 }
 0x1f5   :  { %v115_v20 = vadd.f32 %v114_v19, %v113_v18 }
 0x1f7   :  { %v116_v21 = vrot.slane %v115_v20, 2 }
 0x1f9   :  { %v117_v22 = vadd.f32 %v116_v21, %v115_v20 }
 0x1fb   :  { %v118_v23 = vrot.slane %v117_v22, 1 }
 0x1fd   :  { %v119_v24 = vadd.f32 %v118_v23, %v117_v22 }
 0x1ff   :  { %147 = vpush %v119_v24 }
 0x230   :  { %s148_s0 = spop %147 }
 0x231   :  { %s121_s1 = smul.f32 0.015625, %s148_s0 }
 0x233   :  { %123 = sst [smem:[#allocation2]] %s121_s1 }
 0x234   :  { %131 = dma.smem_to_hbm %s169_s17, 16, %s208_s3, [#allocation3]  }
 0x235   :  { %164 = dma.done.wait [#allocation3], 16  }
 0x236   :  { %165 = vsyncadd [#allocation3], 4294967280 }
 0x237   :  { %135 = sfence }
 0x238   :  { %136 = vsyncpa [#allocation3], 1 }

</bundles_post_ra>
